<compile_context>
chip_gen: v5e
topology: v5e:2x2
jax: 0.10.0
libtpu: 0.0.40
codegen_flags: <defaults>
</compile_context>

<pallas_src>
import jax
import jax.numpy as jnp
import numpy as np
from jax import lax
from jax.experimental import pallas as pl
from jax.experimental.pallas import tpu as pltpu

# ---- small, module-consistent configuration ------------------------------------
B = 2                    # batch
C_IN = 3                 # image channels
PATCH = 64               # patch_size (module default)
K = PATCH // 8           # final conv kernel size AND feature-map side -> 8
C_FEAT = 64              # stand-in for the 2048-channel ResNet feature map
C_QK = C_FEAT // 8       # SelfAttention query/key channels
NUM_CLASSES = 10
N_SPATIAL = K * K        # flattened spatial size (H*W) = 64
BN = B * N_SPATIAL       # batch folded onto the lane axis -> 128 (lane-dense)
N_STREAMS = 2            # bbx / cbx

# stacked Q/K/V weight layout (rows):
ROW_Q = 0                            # rows [0, 8)    : Wq
ROW_K = C_QK                         # rows [8, 16)   : Wk
ROW_V = 2 * C_QK                     # rows [16, 80)  : gamma * Wv
ROW_ONES = 2 * C_QK + C_FEAT         # row  80        : zeros weight, bias 1 -> ones row
C_PROJ = 88                          # padded to a multiple of 8 (rows [81, 88) zero)
V_AUG_ROWS = C_PROJ - ROW_V          # 72 rows fed to the value/row-sum matmul


# ================================ fused Pallas kernel =============================

def _eventnet_attn_kernel(x_ref, wqkv_ref, bqkv_ref, mask_ref, xf_ref):
    """One grid step == one input stream (bbx or cbx).

    x_ref block: (1, C, B*N) with both batch elements packed on the 128-wide lane axis.
    Computes the shared SelfAttention (gamma * value@softmax(qk) + x) for both batch
    elements of this stream in one pass.
    """
    x = x_ref[0]                                                          # (C, BN) = (64, 128)

    # Single stacked 1x1-conv projection: q, k, gamma*v and the ones row in ONE MXU op.
    qkv = jnp.dot(wqkv_ref[...], x, preferred_element_type=jnp.float32) + bqkv_ref[...]
    q = qkv[ROW_Q:ROW_Q + C_QK]                                           # (8,  BN)
    k = qkv[ROW_K:ROW_K + C_QK]                                           # (8,  BN)
    v_aug = qkv[ROW_V:C_PROJ]                                             # (72, BN): gamma*v | ones | 0

    # query_key^T for all batch elements at once (contract channel dim 0 of both on the
    # MXU, no explicit transpose):   st[j, i] = sum_c k[c, j] * q[c, i]
    st = lax.dot_general(k, q, dimension_numbers=(((0,), (0,)), ((), ())),
                         preferred_element_type=jnp.float32)              # (BN_j, BN_i)

    # Batch elements must not attend across each other: precomputed additive mask.
    st = st + mask_ref[...]

    # F.softmax(query_key, dim=1) normalizes over the query index i (lane axis here).
    # Deferred normalization: contract the UN-normalized exponentials, divide after.
    mx = jnp.max(st, axis=-1, keepdims=True)                              # (BN, 1)
    e = jnp.exp(st - mx)                                                  # (BN_j, BN_i)

    # av_aug[c, j] = sum_i v_aug[c, i] * e[j, i]; the folded ones row makes row C_FEAT
    # equal to rowsum[j] = sum_i e[j, i] as a ready-to-broadcast (1, BN) lane row.
    av_aug = lax.dot_general(v_aug, e, dimension_numbers=(((1,), (1,)), ((), ())),
                             preferred_element_type=jnp.float32)          # (72, BN)
    rowsum = av_aug[C_FEAT:C_FEAT + 1, :]                                 # (1, BN)
    inv = pl.reciprocal(rowsum)                                           # exact; only 128 elems

    # gamma is already folded into the V rows, so this is gamma*attn_out + input.
    xf_ref[0] = av_aug[:C_FEAT, :] * inv + x                              # lane-dense store


def eventnet_attention(feats, wqkv, bqkv, mask):
    """feats: (2, C, B*N) lane-dense slab. Returns the attention output slab (2, C, B*N)."""
    flops_stream = (2 * C_PROJ * C_FEAT * BN          # stacked qkv projection
                    + 2 * C_QK * BN * BN               # q^T k
                    + 2 * V_AUG_ROWS * BN * BN         # (value|ones) @ exp
                    + 3 * C_FEAT * BN)                 # scale + residual add
    bytes_accessed = 4 * (2 * N_STREAMS * C_FEAT * BN       # feats in + xf out
                          + C_PROJ * C_FEAT + C_PROJ        # stacked weight + bias
                          + BN * BN)                        # additive mask (fetched once)

    xf_slab = pl.pallas_call(
        _eventnet_attn_kernel,
        out_shape=jax.ShapeDtypeStruct((N_STREAMS, C_FEAT, BN), jnp.float32),
        grid=(N_STREAMS,),
        in_specs=[
            pl.BlockSpec((1, C_FEAT, BN), lambda s: (s, 0, 0)),           # feature slab
            pl.BlockSpec((C_PROJ, C_FEAT), lambda s: (0, 0)),             # stacked Wq|Wk|gWv|1
            pl.BlockSpec((C_PROJ, 1), lambda s: (0, 0)),                  # stacked bias
            pl.BlockSpec((BN, BN), lambda s: (0, 0)),                     # additive batch mask
        ],
        out_specs=pl.BlockSpec((1, C_FEAT, BN), lambda s: (s, 0, 0)),     # attention out
        compiler_params=pltpu.CompilerParams(
            dimension_semantics=("parallel",),          # v7x: one stream per TensorCore
            vmem_limit_bytes=16 * 1024 * 1024),
        cost_estimate=pl.CostEstimate(flops=N_STREAMS * flops_stream,
                                      transcendentals=N_STREAMS * (BN * BN + BN),
                                      bytes_accessed=bytes_accessed),
    )(feats, wqkv, bqkv, mask)
    return xf_slab


# ================================ glue (plain JAX) ================================

def backbone_stub(img, w_proj, b_proj):
    # TODO(synk): EventNet uses pretrained torchvision-style ResNets (base1/base2) that are
    # not part of the provided module; replaced by a deterministic avg-pool(8x8) + 1x1
    # channel-projection stub. It emits the feature map directly in the lane-dense
    # (C, B*N) layout the kernel consumes (einsum output order change == free).
    Bt, C, H, W = img.shape
    s = H // K
    pooled = img.reshape(Bt, C, K, s, K, s).mean(axis=(3, 5))             # (B, 3, K, K)
    feat = jnp.einsum("bchw,oc->obhw", pooled, w_proj) + b_proj[:, None, None, None]
    feat = jax.nn.relu(feat)                                              # (C_FEAT, B, K, K)
    return feat.reshape(C_FEAT, Bt * N_SPATIAL)                           # (C, B*N) lane-dense


def prepare_kernel_params(params):
    """Hoisted out of the jitted forward: stack Wq/Wk/Wv (+ ones row, gamma folded into
    the V rows) into one (88, 64) weight / (88, 1) bias, build the additive block-
    diagonal batch mask, and reshape the final conv weight for the wrapper einsum."""
    a = params["attn"]
    g = a["gamma"][0, 0]

    wqkv = jnp.zeros((C_PROJ, C_FEAT), jnp.float32)
    wqkv = wqkv.at[ROW_Q:ROW_Q + C_QK].set(a["wq"])
    wqkv = wqkv.at[ROW_K:ROW_K + C_QK].set(a["wk"])
    wqkv = wqkv.at[ROW_V:ROW_V + C_FEAT].set(g * a["wv"])                 # gamma folded in

    bqkv = jnp.zeros((C_PROJ, 1), jnp.float32)
    bqkv = bqkv.at[ROW_Q:ROW_Q + C_QK].set(a["bq"])
    bqkv = bqkv.at[ROW_K:ROW_K + C_QK].set(a["bk"])
    bqkv = bqkv.at[ROW_V:ROW_V + C_FEAT].set(g * a["bv"])                 # gamma folded in
    bqkv = bqkv.at[ROW_ONES, 0].set(1.0)                                  # ones row -> rowsum

    blk = jnp.arange(BN) // N_SPATIAL
    mask = jnp.where(blk[:, None] == blk[None, :], 0.0, -1e30).astype(jnp.float32)

    kp = {
        "w_b1": params["w_b1"], "b_b1": params["b_b1"],
        "w_b2": params["w_b2"], "b_b2": params["b_b2"],
        "wqkv": wqkv, "bqkv": bqkv, "mask": mask,
        # final_layer = Conv2d(2C, NC, K): (NC, 2C, K, K) -> (NC, stream, C, N)
        "w_fc_r": params["w_fc"].reshape(NUM_CLASSES, N_STREAMS, C_FEAT, N_SPATIAL),
        "b_fc": params["b_fc"],
    }
    return kp


def eventnet_forward(bbx, cbx, p):
    bbx_s = backbone_stub(bbx, p["w_b1"], p["b_b1"])                      # (C, BN)
    cbx_s = backbone_stub(cbx, p["w_b2"], p["b_b2"])                      # (C, BN)
    feats = jnp.stack([bbx_s, cbx_s], axis=0)                             # (2, C, BN)

    # Shared SelfAttention on both streams in one pallas_call.
    xf_slab = eventnet_attention(feats, p["wqkv"], p["bqkv"], p["mask"])  # (2, C, BN)
    slab4 = xf_slab.reshape(N_STREAMS, C_FEAT, B, N_SPATIAL)

    # final_layer = Conv2d(2C, NC, K) over the full KxK map == tiny dense contraction;
    # done in the wrapper straight off the lane-dense slab (no per-step weight DMA).
    logits = jnp.einsum("scbn,oscn->bo", slab4, p["w_fc_r"]) + p["b_fc"][None, :]

    # Module-facing xf layout (B, 2C, K, K).
    xf = slab4.transpose(2, 0, 1, 3).reshape(B, N_STREAMS * C_FEAT, K, K)
    return logits, xf                                                     # (B, NC), (B, 2C, K, K)


# ============================= reference (plain JAX) ==============================

def _self_attention_ref(x4d, p):
    Bt, C, H, W = x4d.shape
    flat = x4d.reshape(Bt, C, H * W)
    q = jnp.einsum("oc,bcn->bon", p["wq"], flat) + p["bq"][None, :, :]
    k = jnp.einsum("oc,bcn->bon", p["wk"], flat) + p["bk"][None, :, :]
    v = jnp.einsum("oc,bcn->bon", p["wv"], flat) + p["bv"][None, :, :]
    qk = jnp.einsum("bcn,bcm->bnm", q, k)                  # query.permute @ key
    attn = jax.nn.softmax(qk, axis=1)                      # F.softmax(., dim=1)
    av = jnp.einsum("bcn,bnm->bcm", v, attn)
    return (p["gamma"][0, 0] * av + flat).reshape(Bt, C, H, W)


def eventnet_ref(bbx, cbx, p):
    bbx_f = backbone_stub(bbx, p["w_b1"], p["b_b1"]).reshape(C_FEAT, B, K, K).transpose(1, 0, 2, 3)
    cbx_f = backbone_stub(cbx, p["w_b2"], p["b_b2"]).reshape(C_FEAT, B, K, K).transpose(1, 0, 2, 3)
    bbx_f = _self_attention_ref(bbx_f, p["attn"])
    cbx_f = _self_attention_ref(cbx_f, p["attn"])
    xf = jnp.concatenate([bbx_f, cbx_f], axis=1)
    D = xf.shape[1] * xf.shape[2] * xf.shape[3]
    x = xf.reshape(B, D) @ p["w_fc"].reshape(NUM_CLASSES, D).T + p["b_fc"]
    return x, xf


# ==================================== main =======================================

if __name__ == "__main__":
    key = jax.random.PRNGKey(0)
    ks = jax.random.split(key, 12)

    bbx = jax.random.normal(ks[0], (B, C_IN, PATCH, PATCH), jnp.float32)
    cbx = jax.random.normal(ks[1], (B, C_IN, PATCH, PATCH), jnp.float32)

    params = {
        # backbone stubs (base1 / base2 have separate weights)
        "w_b1": 0.1 * jax.random.normal(ks[2], (C_FEAT, C_IN), jnp.float32),
        "b_b1": 0.1 * jax.random.normal(ks[3], (C_FEAT,), jnp.float32),
        "w_b2": 0.1 * jax.random.normal(ks[4], (C_FEAT, C_IN), jnp.float32),
        "b_b2": 0.1 * jax.random.normal(ks[5], (C_FEAT,), jnp.float32),
        # shared SelfAttention(C_FEAT): 1x1 Conv1d weights stored as (out, in)
        "attn": {
            "wq": 0.05 * jax.random.normal(ks[6], (C_QK, C_FEAT), jnp.float32),
            "bq": 0.05 * jax.random.normal(ks[7], (C_QK, 1), jnp.float32),
            "wk": 0.05 * jax.random.normal(ks[8], (C_QK, C_FEAT), jnp.float32),
            "bk": 0.05 * jax.random.normal(ks[9], (C_QK, 1), jnp.float32),
            "wv": 0.05 * jax.random.normal(ks[10], (C_FEAT, C_FEAT), jnp.float32),
            "bv": 0.05 * jax.random.normal(ks[11], (C_FEAT, 1), jnp.float32),
            # PyTorch initializes gamma to 0.0; use a nonzero value so the attention
            # path actually contributes numerically.
            "gamma": jnp.full((1, 1), 0.5, jnp.float32),
        },
        # final_layer = Conv2d(2*C_FEAT, NUM_CLASSES, K), weight (out, in, kH, kW)
        "w_fc": 0.01 * jax.random.normal(jax.random.PRNGKey(123),
                                         (NUM_CLASSES, 2 * C_FEAT, K, K), jnp.float32),
        "b_fc": 0.01 * jax.random.normal(jax.random.PRNGKey(456),
                                         (NUM_CLASSES,), jnp.float32),
    }

    kp = prepare_kernel_params(params)           # weight stacking / mask hoisted out of jit
    x, xf = jax.jit(eventnet_forward)(bbx, cbx, kp)
    jax.block_until_ready((x, xf))

    x_ref, xf_ref = eventnet_ref(bbx, cbx, params)
    np.testing.assert_allclose(np.asarray(xf), np.asarray(xf_ref), rtol=1e-4, atol=1e-4)
    np.testing.assert_allclose(np.asarray(x), np.asarray(x_ref), rtol=1e-4, atol=1e-4)

    assert x.shape == (B, NUM_CLASSES) and xf.shape == (B, 2 * C_FEAT, K, K)
    print("KERNEL_OK")
</pallas_src>

<mosaic_0001>
module attributes {stable_mosaic.version = 11 : i64} {
  func.func @_eventnet_attn_kernel(%arg0: i32, %arg1: memref<1x64x128xf32, #tpu.memory_space<vmem>>, %arg2: memref<88x64xf32, #tpu.memory_space<vmem>>, %arg3: memref<88x1xf32, #tpu.memory_space<vmem>>, %arg4: memref<128x128xf32, #tpu.memory_space<vmem>>, %arg5: memref<1x64x128xf32, #tpu.memory_space<vmem>>) attributes {dimension_semantics = [#tpu.dimension_semantics<parallel>], iteration_bounds = array<i64: 2>, scalar_prefetch = 0 : i64, scratch_operands = 0 : i64, tpu.core_type = #tpu.core_type<tc>, window_params = [{transform_indices = @transform_0, window_bounds = array<i64: 1, 64, 128>}, {pipeline_mode = #tpu.pipeline_mode<synchronous>, transform_indices = @transform_1, window_bounds = array<i64: 88, 64>}, {pipeline_mode = #tpu.pipeline_mode<synchronous>, transform_indices = @transform_2, window_bounds = array<i64: 88, 1>}, {pipeline_mode = #tpu.pipeline_mode<synchronous>, transform_indices = @transform_3, window_bounds = array<i64: 128, 128>}, {transform_indices = @transform_4, window_bounds = array<i64: 1, 64, 128>}]} {
    %c0 = arith.constant 0 : index
    %c0_0 = arith.constant 0 : index
    %c0_1 = arith.constant 0 : index
    %0 = vector.load %arg1[%c0, %c0_0, %c0_1] : memref<1x64x128xf32, #tpu.memory_space<vmem>>, vector<1x64x128xf32>
    %1 = vector.shape_cast %0 : vector<1x64x128xf32> to vector<64x128xf32>
    %c0_2 = arith.constant 0 : index
    %c0_3 = arith.constant 0 : index
    %2 = vector.load %arg2[%c0_2, %c0_3] : memref<88x64xf32, #tpu.memory_space<vmem>>, vector<88x64xf32>
    %cst = arith.constant dense<0.000000e+00> : vector<88x128xf32>
    %3 = tpu.matmul %2, %1, %cst {dimension_numbers = #tpu.dot_dimension_numbers<[1], [0], [0], [1], [0, 0, 1, 1], [], []>} : vector<88x64xf32>, vector<64x128xf32>, vector<88x128xf32> -> vector<88x128xf32>
    %c0_4 = arith.constant 0 : index
    %c0_5 = arith.constant 0 : index
    %4 = vector.load %arg3[%c0_4, %c0_5] : memref<88x1xf32, #tpu.memory_space<vmem>>, vector<88x1xf32>
    %5 = vector.broadcast %4 : vector<88x1xf32> to vector<88x128xf32>
    %6 = arith.addf %3, %5 : vector<88x128xf32>
    %7 = vector.extract_strided_slice %6 {offsets = [0, 0], sizes = [8, 128], strides = [1, 1]} : vector<88x128xf32> to vector<8x128xf32>
    %8 = vector.extract_strided_slice %6 {offsets = [8, 0], sizes = [8, 128], strides = [1, 1]} : vector<88x128xf32> to vector<8x128xf32>
    %9 = vector.extract_strided_slice %6 {offsets = [16, 0], sizes = [72, 128], strides = [1, 1]} : vector<88x128xf32> to vector<72x128xf32>
    %cst_6 = arith.constant dense<0.000000e+00> : vector<128x128xf32>
    %10 = tpu.matmul %8, %7, %cst_6 {dimension_numbers = #tpu.dot_dimension_numbers<[0], [0], [1], [1], [0, 1, 1, 1], [], []>} : vector<8x128xf32>, vector<8x128xf32>, vector<128x128xf32> -> vector<128x128xf32>
    %c0_7 = arith.constant 0 : index
    %c0_8 = arith.constant 0 : index
    %11 = vector.load %arg4[%c0_7, %c0_8] : memref<128x128xf32, #tpu.memory_space<vmem>>, vector<128x128xf32>
    %12 = arith.addf %10, %11 : vector<128x128xf32>
    %cst_9 = arith.constant dense<0xFF800000> : vector<128xf32>
    %13 = vector.multi_reduction <maximumf>, %12, %cst_9 [1] : vector<128x128xf32> to vector<128xf32>
    %14 = vector.shape_cast %13 : vector<128xf32> to vector<128x1xf32>
    %15 = vector.broadcast %14 : vector<128x1xf32> to vector<128x128xf32>
    %16 = arith.subf %12, %15 : vector<128x128xf32>
    %17 = math.exp %16 : vector<128x128xf32>
    %cst_10 = arith.constant dense<0.000000e+00> : vector<72x128xf32>
    %18 = tpu.matmul %9, %17, %cst_10 {dimension_numbers = #tpu.dot_dimension_numbers<[1], [1], [0], [0], [0, 0, 1, 0], [], []>} : vector<72x128xf32>, vector<128x128xf32>, vector<72x128xf32> -> vector<72x128xf32>
    %19 = vector.extract_strided_slice %18 {offsets = [64, 0], sizes = [1, 128], strides = [1, 1]} : vector<72x128xf32> to vector<1x128xf32>
    %20 = tpu.reciprocal %19 : vector<1x128xf32> -> vector<1x128xf32>
    %21 = vector.extract_strided_slice %18 {offsets = [0, 0], sizes = [64, 128], strides = [1, 1]} : vector<72x128xf32> to vector<64x128xf32>
    %22 = vector.broadcast %20 : vector<1x128xf32> to vector<64x128xf32>
    %23 = arith.mulf %21, %22 : vector<64x128xf32>
    %24 = arith.addf %23, %1 : vector<64x128xf32>
    %c0_11 = arith.constant 0 : index
    %c0_12 = arith.constant 0 : index
    %c0_13 = arith.constant 0 : index
    %25 = vector.load %arg5[%c0_11, %c0_12, %c0_13] : memref<1x64x128xf32, #tpu.memory_space<vmem>>, vector<1x64x128xf32>
    %26 = vector.shape_cast %25 : vector<1x64x128xf32> to vector<64x128xf32>
    %27 = vector.shape_cast %24 : vector<64x128xf32> to vector<1x64x128xf32>
    tpu.vector_store %arg5[%c0_11, %c0_12, %c0_13], %27 {strides = array<i32>} : memref<1x64x128xf32, #tpu.memory_space<vmem>>, vector<1x64x128xf32>,
    return
  }
  func.func @transform_0(%arg0: i32) -> (i32, i32, i32) {
    %c0_i32 = arith.constant 0 : i32
    %c0_i32_0 = arith.constant 0 : i32
    %c0_i32_1 = arith.constant 0 : i32
    return %arg0, %c0_i32, %c0_i32_0 : i32, i32, i32
  }
  func.func @transform_1(%arg0: i32) -> (i32, i32) {
    %c0_i32 = arith.constant 0 : i32
    %c0_i32_0 = arith.constant 0 : i32
    %c0_i32_1 = arith.constant 0 : i32
    return %c0_i32, %c0_i32_0 : i32, i32
  }
  func.func @transform_2(%arg0: i32) -> (i32, i32) {
    %c0_i32 = arith.constant 0 : i32
    %c0_i32_0 = arith.constant 0 : i32
    %c0_i32_1 = arith.constant 0 : i32
    return %c0_i32, %c0_i32_0 : i32, i32
  }
  func.func @transform_3(%arg0: i32) -> (i32, i32) {
    %c0_i32 = arith.constant 0 : i32
    %c0_i32_0 = arith.constant 0 : i32
    %c0_i32_1 = arith.constant 0 : i32
    return %c0_i32, %c0_i32_0 : i32, i32
  }
  func.func @transform_4(%arg0: i32) -> (i32, i32, i32) {
    %c0_i32 = arith.constant 0 : i32
    %c0_i32_0 = arith.constant 0 : i32
    %c0_i32_1 = arith.constant 0 : i32
    return %arg0, %c0_i32, %c0_i32_0 : i32, i32, i32
  }
}

</mosaic_0001>

<bundles_post_ra>
// kernel: eventnet_forward.1
= control target key start
LH: loop header
LB: loop body
LE: loop exit
PB: predicated region body
PF: predicated region fallthrough
CT: control target
= control target key end

     0   :  { %s883_s15 = smov 0   ;;  %s1170_s0 = inlined_call_operand.vmem [shape: f32[2,64,128], index: 0, kind: input, shape index: {}]   ;;  %s1171_s1 = inlined_call_operand.vmem [shape: f32[88,64], index: 1, kind: input, shape index: {}]   ;;  %s1172_s2 = inlined_call_operand.vmem [shape: f32[88,1], index: 2, kind: input, shape index: {}]   ;;  %s1173_s3 = inlined_call_operand.vmem [shape: f32[128,128], index: 3, kind: input, shape index: {}]   ;;  %s1174_s4 = inlined_call_operand.vmem [shape: f32[2,64,128], index: 4, kind: output, shape index: {}]  }
   0x1 LB: > { %s747_s16 = sadd.s32 4294967295, %s855_s15   ;;  %p751_p0 = scmp.ge.s32.totalorder %s855_s15, 1  ;;  %s855_s15 = sphi %s883_s15, %s14_s15  }
   0x2   : > { %p162_p1 = scmp.lt.s32.totalorder %s855_s15, 3 }
   0x4   : > { %p163_p2 = pnand %p751_p0, %p162_p1 }
   0x5   : > { %p188_p3 = scmp.lt.s32.totalorder (!%p163_p2), %s747_s16, 1 }
   0x6   : > { %166 = sbr.rel (%p163_p2) target bundleno = 960 (0x3c0), region = 36 }
   0xb   : > { %v218_v0 = vld [vmem:[%s1172_s2 + $0x8] sm:$0xff]  ;;  %v857_v1 = vmov 0   ;;  %s1176_s16 = smov (!%p188_p3, %s747_s16), 1  ;;  %v217_v4 = vld [vmem:[%s1172_s2] sm:$0xff]  ;;  %vm283_vm0 = vcmask 523264   ;;  %vm415_vm1 = vcmask 64512  }
   0xc   : > { %813 = vset.pattern.permute.xlu0 %v857_v1  ;;  %814 = vset.pattern.permute.xlu2 %v857_v1  ;;  %s785_s19 = sshll.u32 %s1176_s16, 6  ;;  %v206_v11 = vld [vmem:[%s1171_s1] sm:$0xff]  ;;  %v207_v12 = vld [vmem:[%s1171_s1 + $0x8] sm:$0xff]  ;;  %v208_v43 = vld [vmem:[%s1171_s1 + $0x10] sm:$0xff] }
   0xd   : > { %235 = vperm.xlu0 %813, %v218_v0   ;;  %s192_s22 = scalar_lea.vmem %s1170_s0, %s785_s19  ;;  %v209_v45 = vld [vmem:[%s1171_s1 + $0x18] sm:$0xff]  ;;  %v210_v47 = vld [vmem:[%s1171_s1 + $0x20] sm:$0xff]  ;;  %v211_v49 = vld [vmem:[%s1171_s1 + $0x28] sm:$0xff]  ;;  %s197_s30 = scalar_lea.vmem %s1174_s4, %s785_s19 }
   0xe   : > { %v902_v2 = vld [vmem:[%s192_s22 + $0x38] sm:$0xff]  ;;  %v904_v3 = vld [vmem:[%s192_s22 + $0x30] sm:$0xff]  ;;  %v910_v5 = vld [vmem:[%s192_s22 + $0x28] sm:$0xff] }
   0xf   : > { %325 = vmatpush.msra.mxu0 %v902_v2  ;;  %v913_v6 = vld [vmem:[%s192_s22 + $0x20] sm:$0xff]  ;;  %v916_v7 = vld [vmem:[%s192_s22 + $0x18] sm:$0xff]  ;;  %v919_v8 = vld [vmem:[%s192_s22 + $0x10] sm:$0xff] }
  0x10   : > { %v922_v9 = vld [vmem:[%s192_s22 + $0x8] sm:$0xff]  ;;  %v925_v10 = vld [vmem:[%s192_s22] sm:$0xff]  ;;  %v212_v51 = vld [vmem:[%s1171_s1 + $0x30] sm:$0xff] }
  0x11   : > { %326 = vmatpush.msra.mxu0 %v904_v3  ;;  %v379_v52 = vld [vmem:[%s1173_s3 + $0x60] sm:$0xff]  ;;  %v213_v55 = vld [vmem:[%s1171_s1 + $0x38] sm:$0xff]  ;;  %v372_v56 = vld [vmem:[%s1173_s3 + $0x28] sm:$0xff] }
  0x12   : > { %v214_v59 = vld [vmem:[%s1171_s1 + $0x40] sm:$0xff]  ;;  %v370_v60 = vld [vmem:[%s1173_s3 + $0x18] sm:$0xff]  ;;  %v381_v61 = vld [vmem:[%s1173_s3 + $0x70] sm:$0xff] }
  0x13   : > { %327 = vmatpush.msra.mxu0 %v910_v5  ;;  %v215_v1 = vld [vmem:[%s1171_s1 + $0x48] sm:$0xff] }
  0x15   : > { %230 = vperm.xlu0 %813, %v217_v4   ;;  %328 = vmatpush.msra.mxu0 %v913_v6  ;;  %v380_v4 = vld [vmem:[%s1173_s3 + $0x68] sm:$0xff] }
  0x17   : > { %329 = vmatpush.msra.mxu0 %v916_v7 }
  0x19   : > { %330 = vmatpush.msra.mxu0 %v919_v8 }
  0x1b   : > { %331 = vmatpush.msra.mxu0 %v922_v9 }
  0x1d   : > { %332 = vmatpush.msra.mxu0 %v925_v10 }
  0x1e   : > { %756 = vmatmul.msk.f32.vlgmr.msra.gmra.mxu0 %vm283_vm0, %v206_v11  ;;  %v382_v11 = vld [vmem:[%s1173_s3 + $0x78] sm:$0xff] }
  0x26   : > { %757 = vmatmul.msk.f32.gmra.mxu0 %vm283_vm0, %v207_v12  ;;  %v368_v12 = vld [vmem:[%s1173_s3 + $0x8] sm:$0xff] }
  0x2e   : > { %758 = vmatmul.msk.f32.gmra.mxu0 %vm283_vm0, %v208_v43 }
  0x36   : > { %759 = vmatmul.msk.f32.gmra.mxu0 %vm283_vm0, %v209_v45  ;;  %v222_v45 = vld [vmem:[%s1172_s2 + $0x28] sm:$0xff] }
  0x3e   : > { %760 = vmatmul.msk.f32.gmra.mxu0 %vm283_vm0, %v210_v47 }
  0x46   : > { %761 = vmatmul.msk.f32.gmra.mxu0 %vm283_vm0, %v211_v49  ;;  %v224_v49 = vld [vmem:[%s1172_s2 + $0x38] sm:$0xff] }
  0x4e   : > { %762 = vmatmul.msk.f32.gmra.mxu0 %vm283_vm0, %v212_v51 }
  0x56   : > { %763 = vmatmul.msk.f32.gmra.mxu0 %vm283_vm0, %v213_v55 }
  0x5e   : > { %764 = vmatmul.msk.f32.gmra.mxu0 %vm283_vm0, %v214_v59 }
  0x66   : > { %765 = vmatmul.msk.f32.gmra.mxu0 %vm283_vm0, %v215_v1 }
  0x7f   : > { %v236_v13 = vpop.permute.xlu0 %235 }
  0x87   : > { %v231_v14 = vpop.permute.xlu0 %230 }
  0x9b   : > { %v334_v15 = vpop.f32.mrf.mxu0 }
  0x9c   : > { %v335_v16 = vadd.f32 %v334_v15, %v231_v14 }
  0x9e   : > { %479 = vmatpush.msra.mxu1 %v335_v16 }
  0xa3   : > { %v337_v17 = vpop.f32.mrf.mxu0 }
  0xa4   : > { %v338_v18 = vadd.f32 %v337_v17, %v236_v13  ;;  %v216_v17 = vld [vmem:[%s1171_s1 + $0x50] sm:$0xff] }
  0xa5   : > { %766 = vmatmul.msk.f32.gmra.mxu0 %vm283_vm0, %v216_v17 }
  0xa6   : > { %383 = vxpose.xlu1.b32.start.end [1/1] (short) %v338_v18, 128  ;;  %v378_v18 = vld [vmem:[%s1173_s3 + $0x58] sm:$0xff] }
 0x14a   : > { %v399_v19 = vpop.trf.xlu1 }
 0x14b   : > { %767 = vmatmul.msk.f32.vlgmr.msra.gmra.mxu1 %vm415_vm1, %v399_v19 }
 0x152   : > { %v400_v20 = vpop.trf.xlu1 }
 0x153   : > { %768 = vmatmul.msk.f32.gmra.mxu1 %vm415_vm1, %v400_v20  ;;  %v377_v20 = vld [vmem:[%s1173_s3 + $0x50] sm:$0xff] }
 0x15a   : > { %v401_v21 = vpop.trf.xlu1 }
 0x15b   : > { %769 = vmatmul.msk.f32.gmra.mxu1 %vm415_vm1, %v401_v21 }
 0x162   : > { %v402_v22 = vpop.trf.xlu1 }
 0x163   : > { %770 = vmatmul.msk.f32.gmra.mxu1 %vm415_vm1, %v402_v22  ;;  %v219_v22 = vld [vmem:[%s1172_s2 + $0x10] sm:$0xff] }
 0x16a   : > { %v403_v23 = vpop.trf.xlu1 }
 0x16b   : > { %771 = vmatmul.msk.f32.gmra.mxu1 %vm415_vm1, %v403_v23  ;;  %v376_v23 = vld [vmem:[%s1173_s3 + $0x48] sm:$0xff] }
 0x172   : > { %v404_v24 = vpop.trf.xlu1 }
 0x173   : > { %772 = vmatmul.msk.f32.gmra.mxu1 %vm415_vm1, %v404_v24 }
 0x17a   : > { %v405_v25 = vpop.trf.xlu1 }
 0x17b   : > { %773 = vmatmul.msk.f32.gmra.mxu1 %vm415_vm1, %v405_v25  ;;  %v220_v25 = vld [vmem:[%s1172_s2 + $0x18] sm:$0xff] }
 0x182   : > { %v406_v26 = vpop.trf.xlu1 }
 0x183   : > { %774 = vmatmul.msk.f32.gmra.mxu1 %vm415_vm1, %v406_v26  ;;  %v375_v26 = vld [vmem:[%s1173_s3 + $0x40] sm:$0xff] }
 0x18a   : > { %v407_v27 = vpop.trf.xlu1 }
 0x18b   : > { %775 = vmatmul.msk.f32.gmra.mxu1 %vm415_vm1, %v407_v27 }
 0x192   : > { %v408_v28 = vpop.trf.xlu1 }
 0x193   : > { %776 = vmatmul.msk.f32.gmra.mxu1 %vm415_vm1, %v408_v28  ;;  %v226_v28 = vld [vmem:[%s1172_s2 + $0x48] sm:$0xff] }
 0x19a   : > { %v409_v29 = vpop.trf.xlu1 }
 0x19b   : > { %777 = vmatmul.msk.f32.gmra.mxu1 %vm415_vm1, %v409_v29  ;;  %v374_v29 = vld [vmem:[%s1173_s3 + $0x38] sm:$0xff] }
 0x1a2   : > { %v410_v30 = vpop.trf.xlu1 }
 0x1a3   : > { %778 = vmatmul.msk.f32.gmra.mxu1 %vm415_vm1, %v410_v30 }
 0x1aa   : > { %v411_v31 = vpop.trf.xlu1 }
 0x1ab   : > { %779 = vmatmul.msk.f32.gmra.mxu1 %vm415_vm1, %v411_v31  ;;  %v227_v31 = vld [vmem:[%s1172_s2 + $0x50] sm:$0xff] }
 0x1b2   : > { %v412_v32 = vpop.trf.xlu1 }
 0x1b3   : > { %780 = vmatmul.msk.f32.gmra.mxu1 %vm415_vm1, %v412_v32  ;;  %v373_v32 = vld [vmem:[%s1173_s3 + $0x30] sm:$0xff] }
 0x1ba   : > { %v413_v33 = vpop.trf.xlu1 }
 0x1bb   : > { %781 = vmatmul.msk.f32.gmra.mxu1 %vm415_vm1, %v413_v33 }
 0x1c2   : > { %v414_v34 = vpop.trf.xlu1 }
 0x1c3   : > { %782 = vmatmul.msk.f32.gmra.mxu1 %vm415_vm1, %v414_v34  ;;  %v223_v34 = vld [vmem:[%s1172_s2 + $0x30] sm:$0xff] }
 0x1c8   : > { %v953_v35 = vpop.f32.mrf.mxu1 }
 0x1d0   : > { %v484_v36 = vpop.f32.mrf.mxu1 }
 0x1d1   : > { %v1030_v16 = vadd.f32 %v484_v36, %v368_v12  ;;  %v371_v36 = vld [vmem:[%s1173_s3 + $0x20] sm:$0xff] }
 0x1d8   : > { %v955_v37 = vpop.f32.mrf.mxu1 }
 0x1e0   : > { %v490_v38 = vpop.f32.mrf.mxu1 }
 0x1e1   : > { %v1009_v63 = vadd.f32 %v490_v38, %v370_v60 }
 0x1e8   : > { %v957_v39 = vpop.f32.mrf.mxu1 }
 0x1e9   : > { %v1095_v38 = vadd.f32 %v957_v39, %v371_v36  ;;  %v225_v39 = vld [vmem:[%s1172_s2 + $0x40] sm:$0xff] }
 0x1f0   : > { %v496_v40 = vpop.f32.mrf.mxu1 }
 0x1f1   : > { %v996_v58 = vadd.f32 %v496_v40, %v372_v56  ;;  %v369_v40 = vld [vmem:[%s1173_s3 + $0x10] sm:$0xff] }
 0x1f8   : > { %v959_v41 = vpop.f32.mrf.mxu1 }
 0x1f9   : > { %v1085_v33 = vadd.f32 %v959_v41, %v373_v32  ;;  %v1102_v41 = vadd.f32 %v955_v37, %v369_v40  ;;  %v221_v37 = vld [vmem:[%s1172_s2 + $0x20] sm:$0xff] }
 0x200   : > { %v961_v42 = vpop.f32.mrf.mxu1 }
 0x201   : > { %v1075_v30 = vadd.f32 %v961_v42, %v374_v29  ;;  %v367_v42 = vld [vmem:[%s1173_s3] sm:$0xff] }
 0x202   : > { %v1109_v43 = vadd.f32 %v953_v35, %v367_v42 }
 0x208   : > { %v505_v44 = vpop.f32.mrf.mxu1 }
 0x209   : > { %v1065_v27 = vadd.f32 %v505_v44, %v375_v26 }
 0x210   : > { %v508_v46 = vpop.f32.mrf.mxu1 }
 0x211   : > { %v1056_v24 = vadd.f32 %v508_v46, %v376_v23 }
 0x218   : > { %v511_v48 = vpop.f32.mrf.mxu1 }
 0x219   : > { %v1047_v21 = vadd.f32 %v511_v48, %v377_v20 }
 0x220   : > { %v514_v50 = vpop.f32.mrf.mxu1 }
 0x221   : > { %v1041_v19 = vadd.f32 %v514_v50, %v378_v18 }
 0x228   : > { %v517_v53 = vpop.f32.mrf.mxu1 }
 0x229   : > { %v986_v54 = vadd.f32 %v517_v53, %v379_v52 }
 0x22b   : > { %553 = vmax.xlane.f32.xlu0 %v986_v54 }
 0x230   : > { %v520_v57 = vpop.f32.mrf.mxu1 }
 0x231   : > { %v1028_v14 = vadd.f32 %v520_v57, %v380_v4 }
 0x233   : > { %539 = vmax.xlane.f32.xlu0 %v996_v58 }
 0x238   : > { %v523_v62 = vpop.f32.mrf.mxu1 }
 0x239   : > { %v1011_v0 = vadd.f32 %v523_v62, %v381_v61 }
 0x23b   : > { %557 = vmax.xlane.f32.xlu2 %v1011_v0  ;;  %535 = vmax.xlane.f32.xlu0 %v1009_v63 }
 0x240   : > { %v526_v13 = vpop.f32.mrf.mxu1 }
 0x241   : > { %v527_v15 = vadd.f32 %v526_v13, %v382_v11  ;;  %v1129_v11 = vpop.f32.mrf.mxu0 }
 0x243   : > { %559 = vmax.xlane.f32.xlu1 %v527_v15  ;;  %555 = vmax.xlane.f32.xlu2 %v1028_v14 }
 0x244   : > { %531 = vmax.xlane.f32.xlu0 %v1030_v16 }
 0x24b   : > { %551 = vmax.xlane.f32.xlu2 %v1041_v19 }
 0x253   : > { %549 = vmax.xlane.f32.xlu2 %v1047_v21 }
 0x258   : > { %240 = vperm.xlu0 %813, %v219_v22  }
 0x25b   : > { %547 = vmax.xlane.f32.xlu2 %v1056_v24 }
 0x260   : > { %245 = vperm.xlu0 %813, %v220_v25  }
 0x263   : > { %545 = vmax.xlane.f32.xlu2 %v1065_v27 }
 0x268   : > { %275 = vperm.xlu0 %813, %v226_v28  }
 0x26b   : > { %543 = vmax.xlane.f32.xlu2 %v1075_v30 }
 0x270   : > { %280 = vperm.xlu0 %813, %v227_v31  }
 0x273   : > { %541 = vmax.xlane.f32.xlu2 %v1085_v33 }
 0x278   : > { %260 = vperm.xlu0 %813, %v223_v34  }
 0x27b   : > { %537 = vmax.xlane.f32.xlu2 %v1095_v38 }
 0x283   : > { %533 = vmax.xlane.f32.xlu2 %v1102_v41 }
 0x28b   : > { %529 = vmax.xlane.f32.xlu2 %v1109_v43 }
 0x29e   : > { %v554_v53 = vpop.xlane.xlu0 %553 }
 0x29f   : > { %v573_v56 = vsub.f32 %v986_v54, %v554_v53 }
 0x2a1   : > { %v601_v60 = vmul.f32 1.442695, %v573_v56 }
 0x2a3   : > { %270 = vperm.xlu2 %814, %v225_v39  }
 0x2ab   : > { %250 = vperm.xlu2 %814, %v221_v37  }
 0x2ae   : > { %v558_v44 = vpop.xlane.xlu2 %557 }
 0x2af   : > { %v575_v47 = vsub.f32 %v1011_v0, %v558_v44 }
 0x2b1   : > { %v605_v51 = vmul.f32 1.442695, %v575_v47 }
 0x2b3   : > { %255 = vperm.xlu2 %814, %v222_v45  }
 0x2b6   : > { %v560_v35 = vpop.xlane.xlu1 %559  ;;  %v556_v46 = vpop.xlane.xlu2 %555 }
 0x2b7   : > { %v576_v48 = vsub.f32 %v527_v15, %v560_v35  ;;  %v574_v52 = vsub.f32 %v1028_v14, %v556_v46 }
 0x2b9   : > { %v607_v50 = vmul.f32 1.442695, %v576_v48  ;;  %v603_v57 = vmul.f32 1.442695, %v574_v52 }
 0x2bb   : > { %815 = vpow2.f32 %v607_v50  ;;  %265 = vperm.xlu2 %814, %v224_v49  }
 0x2bc   : > { %817 = vpow2.f32 %v605_v51 }
 0x2bd   : > { %819 = vpow2.f32 %v603_v57 }
 0x2be   : > { %v552_v55 = vpop.xlane.xlu2 %551  ;;  %821 = vpow2.f32 %v601_v60 }
 0x2bf   : > { %v572_v61 = vsub.f32 %v1041_v19, %v552_v55  ;;  %v1132_v19 = vpop.f32.mrf.mxu0 }
 0x2c1   : > { %v816_v59 = vpop.eup %815  ;;  %v599_v1 = vmul.f32 1.442695, %v572_v61 }
 0x2c2   : > { %609 = vmatpush.xpose.msra.mxu2 %v816_v59  ;;  %787 = vmatpush.xpose.msra.mxu3 %v816_v59  ;;  %v818_v62 = vpop.eup %817 }
 0x2c3   : > { %v820_v54 = vpop.eup %819  ;;  %823 = vpow2.f32 %v599_v1 }
 0x2c4   : > { %v822_v13 = vpop.eup %821 }
 0x2c6   : > { %610 = vmatpush.xpose.msra.mxu2 %v818_v62  ;;  %788 = vmatpush.xpose.msra.mxu3 %v818_v62  ;;  %v550_v0 = vpop.xlane.xlu2 %549 }
 0x2c7   : > { %v571_v4 = vsub.f32 %v1047_v21, %v550_v0  ;;  %v1135_v26 = vpop.f32.mrf.mxu0 }
 0x2c9   : > { %v597_v12 = vmul.f32 1.442695, %v571_v4  ;;  %v824_v17 = vpop.eup %823 }
 0x2ca   : > { %611 = vmatpush.xpose.msra.mxu2 %v820_v54  ;;  %789 = vmatpush.xpose.msra.mxu3 %v820_v54 }
 0x2cb   : > { %825 = vpow2.f32 %v597_v12 }
 0x2ce   : > { %612 = vmatpush.xpose.msra.mxu2 %v822_v13  ;;  %790 = vmatpush.xpose.msra.mxu3 %v822_v13  ;;  %v548_v14 = vpop.xlane.xlu2 %547 }
 0x2cf   : > { %v570_v15 = vsub.f32 %v1056_v24, %v548_v14  ;;  %v540_v24 = vpop.xlane.xlu0 %539  ;;  %v1138_v34 = vpop.f32.mrf.mxu0 }
 0x2d1   : > { %v595_v18 = vmul.f32 1.442695, %v570_v15  ;;  %v826_v20 = vpop.eup %825 }
 0x2d2   : > { %613 = vmatpush.xpose.msra.mxu2 %v824_v17  ;;  %791 = vmatpush.xpose.msra.mxu3 %v824_v17 }
 0x2d3   : > { %827 = vpow2.f32 %v595_v18 }
 0x2d6   : > { %614 = vmatpush.xpose.msra.mxu2 %v826_v20  ;;  %792 = vmatpush.xpose.msra.mxu3 %v826_v20  ;;  %v546_v21 = vpop.xlane.xlu2 %545 }
 0x2d7   : > { %v569_v22 = vsub.f32 %v1065_v27, %v546_v21  ;;  %v566_v27 = vsub.f32 %v996_v58, %v540_v24  ;;  %v536_v42 = vpop.xlane.xlu0 %535  ;;  %v1144_v46 = vpop.f32.mrf.mxu0 }
 0x2d8   : > { %v564_v45 = vsub.f32 %v1009_v63, %v536_v42 }
 0x2d9   : > { %v828_v23 = vpop.eup %827  ;;  %v593_v25 = vmul.f32 1.442695, %v569_v22  ;;  %v587_v44 = vmul.f32 1.442695, %v566_v27 }
 0x2da   : > { %615 = vmatpush.xpose.msra.mxu2 %v828_v23  ;;  %793 = vmatpush.xpose.msra.mxu3 %v828_v23 }
 0x2db   : > { %829 = vpow2.f32 %v593_v25 }
 0x2de   : > { %v544_v28 = vpop.xlane.xlu2 %543 }
 0x2df   : > { %v568_v29 = vsub.f32 %v1075_v30, %v544_v28  ;;  %v532_v58 = vpop.xlane.xlu0 %531  ;;  %v355_v53 = vpop.f32.mrf.mxu0 }
 0x2e0   : > { %v562_v51 = vsub.f32 %v1030_v16, %v532_v58 }
 0x2e1   : > { %v830_v31 = vpop.eup %829  ;;  %v591_v32 = vmul.f32 1.442695, %v568_v29 }
 0x2e2   : > { %616 = vmatpush.xpose.msra.mxu2 %v830_v31  ;;  %794 = vmatpush.xpose.msra.mxu3 %v830_v31  ;;  %v579_v56 = vmul.f32 1.442695, %v562_v51 }
 0x2e3   : > { %831 = vpow2.f32 %v591_v32 }
 0x2e6   : > { %v542_v36 = vpop.xlane.xlu2 %541 }
 0x2e7   : > { %v567_v40 = vsub.f32 %v1085_v33, %v542_v36  ;;  %v583_v33 = vmul.f32 1.442695, %v564_v45  ;;  %v241_v55 = vpop.permute.xlu0 %240  ;;  %v358_v16 = vpop.f32.mrf.mxu0 }
 0x2e8   : > { %v341_v12 = vadd.f32 %v1129_v11, %v241_v55 }
 0x2e9   : > { %v832_v39 = vpop.eup %831  ;;  %v589_v37 = vmul.f32 1.442695, %v567_v40 }
 0x2ea   : > { %617 = vmatpush.xpose.msra.mxu2 %v832_v39  ;;  %795 = vmatpush.xpose.msra.mxu3 %v832_v39 }
 0x2eb   : > { %833 = vpow2.f32 %v589_v37 }
 0x2ec   : > { %835 = vpow2.f32 %v587_v44 }
 0x2ee   : > { %v538_v30 = vpop.xlane.xlu2 %537 }
 0x2ef   : > { %v565_v35 = vsub.f32 %v1095_v38, %v538_v30 }
 0x2f1   : > { %v834_v47 = vpop.eup %833  ;;  %v585_v48 = vmul.f32 1.442695, %v565_v35 }
 0x2f2   : > { %618 = vmatpush.xpose.msra.mxu2 %v834_v47  ;;  %796 = vmatpush.xpose.msra.mxu3 %v834_v47  ;;  %v836_v49 = vpop.eup %835 }
 0x2f3   : > { %837 = vpow2.f32 %v585_v48 }
 0x2f4   : > { %839 = vpow2.f32 %v583_v33 }
 0x2f6   : > { %619 = vmatpush.xpose.msra.mxu2 %v836_v49  ;;  %797 = vmatpush.xpose.msra.mxu3 %v836_v49  ;;  %v534_v50 = vpop.xlane.xlu2 %533 }
 0x2f7   : > { %v563_v63 = vsub.f32 %v1102_v41, %v534_v50  ;;  %v246_v41 = vpop.permute.xlu0 %245 }
 0x2f8   : > { %v344_v14 = vadd.f32 %v1132_v19, %v246_v41 }
 0x2f9   : > { %v838_v52 = vpop.eup %837  ;;  %v581_v38 = vmul.f32 1.442695, %v563_v63 }
 0x2fa   : > { %620 = vmatpush.xpose.msra.mxu2 %v838_v52  ;;  %798 = vmatpush.xpose.msra.mxu3 %v838_v52  ;;  %v840_v57 = vpop.eup %839 }
 0x2fb   : > { %841 = vpow2.f32 %v581_v38 }
 0x2fc   : > { %843 = vpow2.f32 %v579_v56 }
 0x2fe   : > { %621 = vmatpush.xpose.msra.mxu2 %v840_v57  ;;  %799 = vmatpush.xpose.msra.mxu3 %v840_v57  ;;  %v530_v59 = vpop.xlane.xlu2 %529 }
 0x2ff   : > { %v561_v60 = vsub.f32 %v1109_v43, %v530_v59  ;;  %v361_v43 = vpop.f32.mrf.mxu0  ;;  %v276_v13 = vpop.permute.xlu0 %275 }
 0x300   : > { %v362_v15 = vadd.f32 %v361_v43, %v276_v13 }
 0x301   : > { %v842_v61 = vpop.eup %841  ;;  %v577_v62 = vmul.f32 1.442695, %v561_v60 }
 0x302   : > { %622 = vmatpush.xpose.msra.mxu2 %v842_v61  ;;  %800 = vmatpush.xpose.msra.mxu3 %v842_v61  ;;  %v844_v0 = vpop.eup %843 }
 0x303   : > { %845 = vpow2.f32 %v577_v62 }
 0x306   : > { %623 = vmatpush.xpose.msra.mxu2 %v844_v0  ;;  %801 = vmatpush.xpose.msra.mxu3 %v844_v0  ;;  %v271_v1 = vpop.permute.xlu2 %270 }
 0x307   : > { %v359_v54 = vadd.f32 %v358_v16, %v271_v1  ;;  %v364_v18 = vpop.f32.mrf.mxu0  ;;  %v281_v20 = vpop.permute.xlu0 %280 }
 0x308   : > { %v365_v21 = vadd.f32 %v364_v18, %v281_v20 }
 0x309   : > { %v846_v4 = vpop.eup %845 }
 0x30a   : > { %624 = vmatpush.xpose.msra.mxu2 %v846_v4  ;;  %802 = vmatpush.xpose.msra.mxu3 %v846_v4 }
 0x30d   : > { %625 = vmatmul.f32.vlgmr.msra.gmra.mxu2 %v341_v12  ;;  %643 = vmatmul.f32.vlgmr.msra.gmra.mxu3 %v359_v54 }
 0x30e   : > { %v251_v17 = vpop.permute.xlu2 %250 }
 0x30f   : > { %v347_v22 = vadd.f32 %v1135_v26, %v251_v17  ;;  %v261_v25 = vpop.permute.xlu0 %260 }
 0x310   : > { %v353_v24 = vadd.f32 %v1144_v46, %v261_v25 }
 0x315   : > { %628 = vmatmul.f32.gmra.mxu2 %v344_v14  ;;  %646 = vmatmul.f32.gmra.mxu3 %v362_v15 }
 0x316   : > { %v256_v23 = vpop.permute.xlu2 %255 }
 0x317   : > { %v350_v11 = vadd.f32 %v1138_v34, %v256_v23 }
 0x31d   : > { %631 = vmatmul.f32.gmra.mxu2 %v347_v22  ;;  %649 = vmatmul.f32.gmra.mxu3 %v365_v21 }
 0x31e   : > { %v266_v19 = vpop.permute.xlu2 %265 }
 0x31f   : > { %v356_v28 = vadd.f32 %v355_v53, %v266_v19 }
 0x325   : > { %634 = vmatmul.f32.gmra.mxu2 %v350_v11 }
 0x32d   : > { %637 = vmatmul.f32.gmra.mxu2 %v353_v24 }
 0x335   : > { %640 = vmatmul.f32.gmra.mxu2 %v356_v28 }
 0x390   : > { %v626_v29 = vpop.f32.mrf.mxu2  ;;  %v644_v31 = vpop.f32.mrf.mxu3 }
 0x398   : > { %v629_v32 = vpop.f32.mrf.mxu2  ;;  %v647_v36 = vpop.f32.mrf.mxu3 }
 0x3a0   : > { %v632_v27 = vpop.f32.mrf.mxu2  ;;  %v650_v40 = vpop.f32.mrf.mxu3 }
 0x3a1   : > { %847 = vrcp.f32 %v650_v40  ;;  %v664_v34 = vand.u32 2147483648, %v650_v40  ;;  %v662_v30 = vand.u32 2147483647, %v650_v40  ;;  %vm658_vm3 = vweird.f32 %v650_v40 }
 0x3a3   : > { %v665_v35 = vor.u32 1.1754944e-38, %v664_v34  ;;  %vm663_vm5 = vcmp.eq.f32.partialorder %v662_v30, 8.507059e+37 }
 0x3a7   : > { %v848_v26 = vpop.eup %847 }
 0x3a8   : > { %v654_v42 = vmul.f32 %v848_v26, %v650_v40  ;;  %v635_v39 = vpop.f32.mrf.mxu2  ;;  %vm659_vm2 = vweird.f32 %v848_v26 }
 0x3a9   : > { %vm660_vm4 = vmor %vm658_vm3, %vm659_vm2 }
 0x3aa   : > { %v655_v37 = vsub.f32 1.0, %v654_v42 }
 0x3ac   : > { %v656_v44 = vmul.f32 %v848_v26, %v655_v37 }
 0x3ae   : > { %v657_v45 = vadd.f32 %v848_v26, %v656_v44 }
 0x3b0   : > { %v661_v46 = vsel %vm660_vm4, %v848_v26, %v657_v45  ;;  %v638_v47 = vpop.f32.mrf.mxu2 }
 0x3b1   : > { %v666_v48 = vsel %vm663_vm5, %v665_v35, %v661_v46 }
 0x3b2   : > { %v667_v58 = vperm.slane %v666_v48, 0 }
 0x3b4   : > { %v668_v33 = vmul.f32 %v667_v58, %v626_v29  ;;  %v669_v49 = vmul.f32 %v667_v58, %v629_v32  ;;  %v670_v50 = vmul.f32 %v667_v58, %v632_v27  ;;  %v674_v51 = vmul.f32 %v667_v58, %v644_v31 }
 0x3b5   : > { %v675_v63 = vmul.f32 %v667_v58, %v647_v36  ;;  %v671_v52 = vmul.f32 %v667_v58, %v635_v39  ;;  %v672_v56 = vmul.f32 %v667_v58, %v638_v47 }
 0x3b6   : > { %v676_v38 = vadd.f32 %v668_v33, %v925_v10  ;;  %v677_v53 = vadd.f32 %v669_v49, %v922_v9  ;;  %v678_v55 = vadd.f32 %v670_v50, %v919_v8  ;;  %v682_v57 = vadd.f32 %v674_v51, %v904_v3 }
 0x3b7   : > { %v683_v59 = vadd.f32 %v675_v63, %v902_v2  ;;  %v679_v61 = vadd.f32 %v671_v52, %v916_v7  ;;  %v680_v16 = vadd.f32 %v672_v56, %v913_v6 }
 0x3b8   : > { %684 = vst [vmem:[%s197_s30] sm:$0xff] %v676_v38  ;;  %v641_v60 = vpop.f32.mrf.mxu2 }
 0x3b9   : > { %685 = vst [vmem:[%s197_s30 + $0x8] sm:$0xff] %v677_v53  ;;  %v673_v62 = vmul.f32 %v667_v58, %v641_v60 }
 0x3ba   : > { %686 = vst [vmem:[%s197_s30 + $0x10] sm:$0xff] %v678_v55 }
 0x3bb   : > { %690 = vst [vmem:[%s197_s30 + $0x30] sm:$0xff] %v682_v57  ;;  %v681_v10 = vadd.f32 %v673_v62, %v910_v5 }
 0x3bc   : > { %691 = vst [vmem:[%s197_s30 + $0x38] sm:$0xff] %v683_v59 }
 0x3bd   : > { %687 = vst [vmem:[%s197_s30 + $0x18] sm:$0xff] %v679_v61 }
 0x3be   : > { %688 = vst [vmem:[%s197_s30 + $0x20] sm:$0xff] %v680_v16 }
 0x3bf   : > { %689 = vst [vmem:[%s197_s30 + $0x28] sm:$0xff] %v681_v10 }
 0x3c0 PF: > { %s14_s15 = sadd.s32 1, %s855_s15  }
 0x3c1   : > { %p11_p4 = scmp.ge.s32.totalorder %s14_s15, 4  }
 0x3c3   :  { %13 = sbr.rel (!%p11_p4) target bundleno = 1 (0x1), region = 66 }

</bundles_post_ra>
